<compile_context>
chip_gen: v7x
topology: tpu7x:2x2x1
jax: 0.10.0
libtpu: 0.0.40
codegen_flags: <defaults>
</compile_context>

<pallas_src>
import functools

import jax
import jax.numpy as jnp
from jax import lax
from jax.experimental import pallas as pl
from jax.experimental.pallas import tpu as pltpu


def _topk_accuracy_kernel(logits_ref, labels_ref, out_ref, *,
                          k, threshold, n_total, tile_n, steps):
    pc = pl.program_id(0)          # "parallel" axis: partial-accumulator id
    j = pl.program_id(1)           # "arbitrary" axis: reduction over row tiles

    # Init this core's resident accumulator block on its first reduction step.
    @pl.when(j == 0)
    def _():
        out_ref[...] = jnp.zeros_like(out_ref)

    logits = logits_ref[...].astype(jnp.float32)                 # (T, C)
    labels = labels_ref[...]                                     # (T, 1) int32
    t, c = logits.shape

    class_iota = lax.broadcasted_iota(jnp.int32, (t, c), 1)      # (T, C)
    is_label = class_iota == labels                              # (T, C)

    # Logit of the true class per row (select + lane max; no gather).
    l_y = jnp.max(jnp.where(is_label, logits, -jnp.inf), axis=1, keepdims=True)

    # Stable rank of the true class (ties broken toward lower index).
    beats = (logits > l_y) | ((logits == l_y) & (class_iota < labels))
    rank = jnp.sum(beats.astype(jnp.int32), axis=1, keepdims=True)   # (T, 1)
    correct = rank < k                                               # (T, 1)

    if threshold > 0.0:
        # Only the label's softmax probability is needed for the threshold.
        m = jnp.max(logits, axis=1, keepdims=True)
        sum_e = jnp.sum(jnp.exp(logits - m), axis=1, keepdims=True)
        p_label = jnp.exp(l_y - m) / sum_e
        correct = correct & (p_label >= jnp.float32(threshold))
    # else: softmax probs are strictly positive, so threshold <= 0 is a no-op
    # and the whole exp / reduce / divide pass is skipped at trace time.

    correct_f = correct.astype(jnp.float32)                          # (T, 1)

    if n_total % tile_n != 0:
        # Mask padded rows of the ragged last tile.
        row_iota = lax.broadcasted_iota(jnp.int32, (t, 1), 0)
        global_row = (pc * steps + j) * tile_n + row_iota
        correct_f = jnp.where(global_row < n_total, correct_f, 0.0)

    # Per-tile count of correct rows, accumulated (broadcast) into this core's
    # resident lane-dense (8, 128) output block -> unmasked stores.
    tile_count = jnp.sum(correct_f, axis=0, keepdims=True)           # (1, 1)
    out_ref[...] += tile_count


def topk_accuracy(logits: jax.Array, labels: jax.Array, num_classes: int,
                  k: int, threshold: float = 0.0,
                  tile_n=None) -> jax.Array:
    """Top-k accuracy. logits: (N, C) float (any dtype), labels: (N,) int."""
    assert logits.ndim == 2
    assert labels.ndim == 1
    assert logits.shape[0] == labels.shape[0]
    n, c = logits.shape
    assert c == num_classes

    labels2d = labels.astype(jnp.int32).reshape(n, 1)

    # Tile over N. No host-side dtype cast: the kernel reads the native dtype
    # (bf16 stays bf16 in HBM) and upcasts per tile inside VMEM.
    itemsize = jnp.dtype(logits.dtype).itemsize
    if tile_n is None:
        # Keep one logits buffer around ~2 MiB so double-buffering stays well
        # under VMEM on every generation (v5e 16 MiB scoped, v7x 64 MiB total).
        budget_rows = max(8, (2 * 1024 * 1024) // max(1, c * itemsize))
        tile_n = min(n, 1024, budget_rows)
    tile_n = min(int(tile_n), n)
    if n >= 8:
        tile_n = max(8, (tile_n // 8) * 8)       # sublane-aligned tiles

    nb = pl.cdiv(n, tile_n)                      # number of row tiles
    # Split row tiles across 2 partial accumulators (leading "parallel" axis so
    # v7x's two TensorCores each take half); fall back to 1 if nb is odd.
    p_cores = 2 if nb % 2 == 0 else 1
    steps = nb // p_cores

    kernel = functools.partial(
        _topk_accuracy_kernel,
        k=int(k), threshold=float(threshold),
        n_total=n, tile_n=tile_n, steps=steps)

    out = pl.pallas_call(
        kernel,
        # Lane-dense (8, 128) partial block per accumulator (unmasked stores).
        out_shape=jax.ShapeDtypeStruct((p_cores * 8, 128), jnp.float32),
        grid_spec=pltpu.PrefetchScalarGridSpec(
            num_scalar_prefetch=0,
            grid=(p_cores, steps),
            in_specs=[
                pl.BlockSpec((tile_n, c), lambda pc, j: (pc * steps + j, 0)),
                pl.BlockSpec((tile_n, 1), lambda pc, j: (pc * steps + j, 0)),
            ],
            out_specs=pl.BlockSpec((8, 128), lambda pc, j: (pc, 0)),
        ),
        compiler_params=pltpu.CompilerParams(
            dimension_semantics=("parallel", "arbitrary"),
            vmem_limit_bytes=32 * 1024 * 1024,
        ),
    )(logits, labels2d)

    partials = out[::8, 0]                       # (p_cores,) partial counts
    return jnp.sum(partials) / jnp.float32(n)


def _reference(logits, labels, k, threshold):
    probs = jax.nn.softmax(logits.astype(jnp.float32), axis=1)
    topk_probs, topk_idx = jax.lax.top_k(probs, k)
    match = (labels[:, None] == topk_idx) & (topk_probs >= threshold)
    correct = jnp.any(match, axis=1).astype(jnp.float32)
    return jnp.mean(correct)


if __name__ == "__main__":
    key = jax.random.PRNGKey(0)

    def check(batch, num_classes, k, threshold, seed, tile_n):
        kl, kb = jax.random.split(jax.random.fold_in(key, seed))
        logits = jax.random.normal(kl, (batch, num_classes), dtype=jnp.float32)
        labels = jax.random.randint(kb, (batch,), 0, num_classes,
                                    dtype=jnp.int32)
        got = jax.block_until_ready(
            topk_accuracy(logits, labels, num_classes, k, threshold,
                          tile_n=tile_n))
        want = jax.block_until_ready(_reference(logits, labels, k, threshold))
        assert jnp.allclose(got, want, atol=1e-6), (
            batch, num_classes, k, threshold, got, want)

    # Even tile count -> 2-way "parallel" partial accumulators exercised.
    check(batch=16, num_classes=4, k=2, threshold=0.0, seed=0, tile_n=8)
    # Ragged last tile (N % tile != 0) -> row masking, single accumulator.
    check(batch=20, num_classes=4, k=1, threshold=0.0, seed=1, tile_n=8)
    # Positive threshold -> softmax-gated path exercised.
    check(batch=16, num_classes=4, k=3, threshold=0.3, seed=2, tile_n=8)

    print("KERNEL_OK")
</pallas_src>

<mosaic_0001>
module attributes {stable_mosaic.version = 11 : i64} {
  func.func @_topk_accuracy_kernel(%arg0: i32, %arg1: i32, %arg2: memref<8x4xf32, #tpu.memory_space<vmem>>, %arg3: memref<8x1xi32, #tpu.memory_space<vmem>>, %arg4: memref<8x128xf32, #tpu.memory_space<vmem>>) attributes {dimension_semantics = [#tpu.dimension_semantics<parallel>, #tpu.dimension_semantics<arbitrary>], iteration_bounds = array<i64: 2, 1>, scalar_prefetch = 0 : i64, scratch_operands = 0 : i64, tpu.core_type = #tpu.core_type<tc>, window_params = [{transform_indices = @transform_0, window_bounds = array<i64: 8, 4>}, {transform_indices = @transform_1, window_bounds = array<i64: 8, 1>}, {transform_indices = @transform_2, window_bounds = array<i64: 8, 128>}]} {
    %c0_i32 = arith.constant 0 : i32
    %0 = arith.cmpi eq, %arg1, %c0_i32 : i32
    %1 = arith.extui %0 : i1 to i32
    %c0_i32_0 = arith.constant 0 : i32
    %2 = arith.cmpi ne, %1, %c0_i32_0 : i32
    scf.if %2 {
      %cst_11 = arith.constant 0.000000e+00 : f32
      %33 = vector.broadcast %cst_11 : f32 to vector<8x128xf32>
      %c0_12 = arith.constant 0 : index
      %c0_13 = arith.constant 0 : index
      %34 = vector.load %arg4[%c0_12, %c0_13] : memref<8x128xf32, #tpu.memory_space<vmem>>, vector<8x128xf32>
      tpu.vector_store %arg4[%c0_12, %c0_13], %33 {strides = array<i32>} : memref<8x128xf32, #tpu.memory_space<vmem>>, vector<8x128xf32>,
    } else {
    }
    %c0 = arith.constant 0 : index
    %c0_1 = arith.constant 0 : index
    %3 = vector.load %arg2[%c0, %c0_1] : memref<8x4xf32, #tpu.memory_space<vmem>>, vector<8x4xf32>
    %c0_2 = arith.constant 0 : index
    %c0_3 = arith.constant 0 : index
    %4 = vector.load %arg3[%c0_2, %c0_3] : memref<8x1xi32, #tpu.memory_space<vmem>>, vector<8x1xi32>
    %5 = tpu.iota {dimensions = array<i32: 1>} : vector<8x4xi32>
    %6 = vector.broadcast %4 : vector<8x1xi32> to vector<8x4xi32>
    %7 = arith.cmpi eq, %5, %6 : vector<8x4xi32>
    %cst = arith.constant 0xFF800000 : f32
    %8 = vector.broadcast %cst : f32 to vector<8x4xf32>
    %9 = arith.select %7, %3, %8 : vector<8x4xi1>, vector<8x4xf32>
    %cst_4 = arith.constant dense<0xFF800000> : vector<8xf32>
    %10 = vector.multi_reduction <maximumf>, %9, %cst_4 [1] : vector<8x4xf32> to vector<8xf32>
    %11 = vector.shape_cast %10 : vector<8xf32> to vector<8x1xf32>
    %12 = vector.broadcast %11 : vector<8x1xf32> to vector<8x4xf32>
    %13 = arith.cmpf ogt, %3, %12 : vector<8x4xf32>
    %14 = vector.broadcast %11 : vector<8x1xf32> to vector<8x4xf32>
    %15 = arith.cmpf oeq, %3, %14 : vector<8x4xf32>
    %16 = vector.broadcast %4 : vector<8x1xi32> to vector<8x4xi32>
    %17 = arith.cmpi slt, %5, %16 : vector<8x4xi32>
    %18 = arith.andi %15, %17 : vector<8x4xi1>
    %19 = arith.ori %13, %18 : vector<8x4xi1>
    %20 = arith.extui %19 : vector<8x4xi1> to vector<8x4xi32>
    %cst_5 = arith.constant dense<0> : vector<8xi32>
    %21 = vector.multi_reduction <add>, %20, %cst_5 [1] : vector<8x4xi32> to vector<8xi32>
    %22 = vector.shape_cast %21 : vector<8xi32> to vector<8x1xi32>
    %c2_i32 = arith.constant 2 : i32
    %23 = vector.broadcast %c2_i32 : i32 to vector<8x1xi32>
    %24 = arith.cmpi slt, %22, %23 : vector<8x1xi32>
    %25 = arith.extui %24 : vector<8x1xi1> to vector<8x1xi32>
    %26 = arith.sitofp %25 : vector<8x1xi32> to vector<8x1xf32>
    %cst_6 = arith.constant dense<0.000000e+00> : vector<1xf32>
    %27 = vector.multi_reduction <add>, %26, %cst_6 [0] : vector<8x1xf32> to vector<1xf32>
    %28 = vector.shape_cast %27 : vector<1xf32> to vector<1x1xf32>
    %c0_7 = arith.constant 0 : index
    %c0_8 = arith.constant 0 : index
    %29 = vector.load %arg4[%c0_7, %c0_8] : memref<8x128xf32, #tpu.memory_space<vmem>>, vector<8x128xf32>
    %30 = vector.broadcast %28 : vector<1x1xf32> to vector<8x128xf32>
    %31 = arith.addf %29, %30 : vector<8x128xf32>
    %c0_9 = arith.constant 0 : index
    %c0_10 = arith.constant 0 : index
    %32 = vector.load %arg4[%c0_9, %c0_10] : memref<8x128xf32, #tpu.memory_space<vmem>>, vector<8x128xf32>
    tpu.vector_store %arg4[%c0_9, %c0_10], %31 {strides = array<i32>} : memref<8x128xf32, #tpu.memory_space<vmem>>, vector<8x128xf32>,
    return
  }
  func.func @transform_0(%arg0: i32, %arg1: i32) -> (i32, i32) {
    %c1_i32 = arith.constant 1 : i32
    %0 = arith.muli %arg0, %c1_i32 : i32
    %1 = arith.addi %0, %arg1 : i32
    %c0_i32 = arith.constant 0 : i32
    %c0_i32_0 = arith.constant 0 : i32
    return %1, %c0_i32 : i32, i32
  }
  func.func @transform_1(%arg0: i32, %arg1: i32) -> (i32, i32) {
    %c1_i32 = arith.constant 1 : i32
    %0 = arith.muli %arg0, %c1_i32 : i32
    %1 = arith.addi %0, %arg1 : i32
    %c0_i32 = arith.constant 0 : i32
    %c0_i32_0 = arith.constant 0 : i32
    return %1, %c0_i32 : i32, i32
  }
  func.func @transform_2(%arg0: i32, %arg1: i32) -> (i32, i32) {
    %c0_i32 = arith.constant 0 : i32
    %c0_i32_0 = arith.constant 0 : i32
    return %arg0, %c0_i32 : i32, i32
  }
}

</mosaic_0001>

<bundles_post_ra>
// kernel: tpu_custom_call.1
= control target key start
LH: loop header
LB: loop body
LE: loop exit
PB: predicated region body
PF: predicated region fallthrough
CT: control target
= control target key end

     0   :  { %7 = vsyncpa [#allocation3], 0  ;;  %s608_s0 = inlined_call_operand.vmem [shape: f32[16,4], index: 0, kind: input, shape index: {}]   ;;  %s609_s1 = inlined_call_operand.vmem [shape: s32[16,1], index: 1, kind: input, shape index: {}]   ;;  %s610_s2 = inlined_call_operand.hbm [shape: f32[16,128], index: 2, kind: output, shape index: {}]  }
   0x1   :  { %9 = vsyncpa [#allocation3 + $0x1], 0  ;;  %s493_s9 = smov 0   ;;  %s495_s10 = smov 0  }
   0x2   :  { %s497_s11 = smov 0   ;;  %s499_s12 = smov 0  }
   0x3   :  { %s501_s13 = smov 0   ;;  %s503_s14 = smov 0  }
   0x4 LB: > { %s324_s15 = sadd.s32 4294967295, %s473_s14   ;;  %s325_s16 = sadd.s32 4294967294, %s473_s14   ;;  %s473_s14 = sphi %s503_s14, %s15_s14   ;;  %s469_s13 = sphi %s501_s13, %s617_s13   ;;  %s465_s12 = sphi %s499_s12, %s616_s12   ;;  %s461_s11 = sphi %s497_s11, %s615_s11   ;;  %s457_s10 = sphi %s495_s10, %s614_s10   ;;  %s453_s9 = sphi %s493_s9, %s613_s9  }
   0x5   : > { %s27_s17 = sadd.s32 1, %s469_s13  ;;  %s90_s18 = sadd.s32 1, %s461_s11 }
   0x6   : > { %p29_p0 = scmp.ge.s32.totalorder %s27_s17, 2  ;;  %p100_p1 = scmp.ne.s32.totalorder %s461_s11, %s457_s10 }
   0x7   : > { %p101_p2 = scmp.eq.s32.totalorder %s324_s15, 1  ;;  %p106_p3 = scmp.ne.s32.totalorder %s457_s10, %s453_s9 }
   0x8   : > { %s619_s17 = smov (%p29_p0, %s27_s17), 0  ;;  %p107_p5 = scmp.eq.s32.totalorder %s325_s16, 1 }
   0x9   : > { %p533_p4 = por %p101_p2, %p100_p1  ;;  %s87_s20 = ssub.s32 %s469_s13, %s619_s17 }
   0xa   : > { %p328_p6 = scmp.ge.s32.totalorder %s473_s14, 1  ;;  %p88_p7 = scmp.eq.s32.totalorder %s87_s20, 0 }
   0xb   : > { %p540_p8 = por %p107_p5, %p106_p3  ;;  %p143_p9 = scmp.lt.s32.totalorder %s473_s14, 3 }
   0xc   : > { %s546_s22 = scalar_select %p88_p7, %s461_s11, %s90_s18  }
   0xd   : > { %p144_p10 = pnand %p328_p6, %p143_p9 }
   0xe   : > { %p171_p11 = scmp.lt.s32.totalorder (!%p144_p10), %s465_s12, 1  ;;  %v475_v0 = vmov (!%p144_p10), 0   ;;  %v189_v2 = vlaneseq (!%p144_p10)  ;;  %vm196_vm0 = vcmask (!%p144_p10), 31744   ;;  %v476_v21 = vmov (!%p144_p10), 0.0   ;;  %s167_s3 = sand.u32 (!%p144_p10), 1, %s457_s10  }
   0xf   : > { %147 = sbr.rel (%p144_p10) target bundleno = 487 (0x1e7), region = 28  ;;  %394 = vset.pattern.permute.xlu0 (!%p144_p10), %v475_v0  ;;  %s329_s4 = sshll.u32 (!%p144_p10), %s167_s3, 3 }
  0x10   : > { %v190_v3 = vand.u32 (!%p144_p10), 127, %v189_v2  ;;  %s334_s5 = sshll.u32 (!%p144_p10), %s465_s12, 7  ;;  %s169_s6 = scalar_lea.vmem (!%p144_p10), [#allocation2], %s329_s4 }
  0x11   : > { %s245_s7 = sshll.u32 (!%p144_p10), %s169_s6, 4  ;;  %s561_s16 = scalar_lea.hbm (!%p144_p10), %s610_s2, %s334_s5  ;;  %s563_s7 = int_to_ptr.vmem [resolvable:$true] %s245_s7 }
  0x12   : > { %s232_s18 = scalar_lea.sflag (!%p144_p10), [#allocation3], %s167_s3  ;;  %s395_s20 = scalar_lea.vmem (!%p144_p10), %s563_s7, 128 }
  0x13   : > { %p396_p12 = scmp.ne.s32.totalorder (!%p144_p10), %s563_s7, %s395_s20 }
  0x15   : > { %p397_p13 = pnand (!%p144_p10), %p396_p12, %p533_p4 }
  0x16   : > { %s172_s23 = scalar_select %p171_p11, %s465_s12, 1 }
  0x17   : > { %p398_p0 = pneg %p397_p13  ;;  %s477_s12 = smov [#allocation2]  }
  0x18   : > { %s330_s24 = sshll.u32 %s172_s23, 3  ;;  %s399_s23 = sshll.u32 %s477_s12, 4  ;;  %s400_s23 = int_to_ptr.vmem [resolvable:$false] %s399_s23 }
  0x19   : > { %s180_s27 = scalar_lea.vmem %s609_s1, %s330_s24  ;;  %s174_s30 = scalar_lea.vmem %s608_s0, %s330_s24 }
  0x1a   : > { %v188_v1 = vld [vmem:[%s180_s27] sm:$0xff]  ;;  %s401_s24 = scalar_lea.vmem %s400_s23, 256  ;;  %p402_p1 = scmp.lt.s32.totalorder %s563_s7, %s400_s23 }
  0x1b   : > { %192 = vperm.xlu0 %394, %v188_v1   ;;  %v187_v4 = vld [vmem:[%s174_s30] sm:$0xff]  ;;  %p403_p2 = scmp.lt.s32.totalorder %s401_s24, %s395_s20 }
  0x1d   : > { %p404_p3 = por %p403_p2, %p402_p1 }
  0x1f   : > { %p405_p5 = pnand %p404_p3, %p398_p0 }
  0x9a   : > { %v193_v5 = vpop.permute.xlu0 %192 }
  0x9b   : > { %vm194_vm1 = vcmp.eq.s32.totalorder %v190_v3, %v193_v5  ;;  %vm202_vm2 = vcmp.lt.s32.totalorder %v190_v3, %v193_v5 }
  0x9c   : > { %v195_v6 = vsel %vm194_vm1, %v187_v4, -inf }
  0x9d   : > { %v197_v7 = vsel %vm196_vm0, %v195_v6, -inf }
  0x9e   : > { %198 = vmax.xlane.f32.xlu0 %v197_v7 }
 0x12b   : > { %v199_v8 = vpop.xlane.xlu0 %198 }
 0x12c   : > { %vm200_vm3 = vcmp.gt.f32.partialorder %v187_v4, %v199_v8  ;;  %vm201_vm4 = vcmp.eq.f32.partialorder %v187_v4, %v199_v8 }
 0x12d   : > { %vm203_vm5 = vmand %vm201_vm4, %vm202_vm2 }
 0x12e   : > { %vm204_vm6 = vmor %vm200_vm3, %vm203_vm5 }
 0x12f   : > { %v205_v9 = vsel %vm204_vm6, 1, %v475_v0 }
 0x130   : > { %v206_v10 = vsel %vm196_vm0, %v205_v9, 0 }
 0x131   : > { %v208_v11 = vshrl.u32 %v206_v10, 16  ;;  %v207_v13 = vand.u32 65535, %v206_v10 }
 0x133   : > { %v210_v12 = vcvt.s32.f32 %v208_v11  ;;  %v209_v14 = vcvt.s32.f32 %v207_v13 }
 0x135   : > { %213 = vadd.xlane.f32.xlu1 %v210_v12 }
 0x139   : > { %211 = vadd.xlane.f32.xlu1 %v209_v14 }
 0x1c2   : > { %v214_v15 = vpop.xlane.xlu1 %213 }
 0x1c3   : > { %v216_v16 = vcvt.f32.s32 %v214_v15 }
 0x1c5   : > { %v217_v18 = vshll.u32 %v216_v16, 16 }
 0x1c6   : > { %v212_v17 = vpop.xlane.xlu1 %211 }
 0x1c7   : > { %v215_v19 = vcvt.f32.s32 %v212_v17 }
 0x1c9   : > { %v218_v20 = vadd.s32 %v217_v18, %v215_v19 }
 0x1cb   : > { %vm219_vm7 = vcmp.lt.s32.totalorder %v218_v20, 2 }
 0x1cc   : > { %v332_v22 = vsel %vm219_vm7, 1.0, %v476_v21 }
 0x1cd   : > { %v222_v23 = vrot.slane %v332_v22, 4 }
 0x1cf   : > { %v223_v24 = vadd.f32 %v332_v22, %v222_v23 }
 0x1d1   : > { %v224_v25 = vrot.slane %v223_v24, 2 }
 0x1d3   : > { %v225_v26 = vadd.f32 %v224_v25, %v223_v24 }
 0x1d5   : > { %v226_v27 = vrot.slane %v225_v26, 1 }
 0x1d7   : > { %v227_v28 = vadd.f32 %v226_v27, %v225_v26 }
 0x1d9   : > { %230 = vst [vmem:[%s169_s6] sm:$0xff] %v227_v28 }
 0x1da   : > { %408 = shalt.err (!%p405_p5)
}
 0x1db   : > { %s409_s25 = scalar_lea.hbm %s561_s16, 128  ;;  %s413_s28 = scalar_lea.hbm %s610_s2, 256 }
 0x1dc   : > { %p410_p6 = scmp.ne.s32.totalorder %s561_s16, %s409_s25  ;;  %p414_p10 = scmp.lt.u32.totalorder %s561_s16, %s610_s2 }
 0x1dd   : > { %p415_p11 = scmp.lt.u32.totalorder %s413_s28, %s409_s25  ;;  %p417_p13 = scmp.lt.u32.totalorder %s409_s25, %s561_s16 }
 0x1de   : > { %p411_p7 = pnand %p410_p6, %p533_p4 }
 0x1df   : > { %p416_p12 = por %p415_p11, %p414_p10 }
 0x1e0   : > { %p412_p9 = pneg %p411_p7 }
 0x1e1   : > { %p418_p0 = por %p417_p13, %p416_p12 }
 0x1e3   : > { %p419_p1 = pnand %p418_p0, %p412_p9 }
 0x1e5   : > { %422 = shalt.err (!%p419_p1)
}
 0x1e6   : > { %337 = dma.vmem_to_hbm [thread:$0]  (%p533_p4), %s563_s7, 128, %s561_s16, %s232_s18  }
 0x1e7 PF: > { %p343_p2 = scmp.ge.s32.totalorder %s473_s14, 2  ;;  %s257_s3 = sand.u32 1, %s453_s9  }
 0x1e8   : > { %s258_s4 = scalar_lea.sflag [#allocation3], %s257_s3 }
 0x1e9   : > { %p340_p3 = pnand %p343_p2, %p540_p8 }
 0x1eb   : > { %448 = dma.done.wait (!%p340_p3), %s258_s4, 128  }
 0x1ec   : > { %450 = vsyncadd (!%p340_p3), %s258_s4, 4294967168  ;;  %s15_s14 = sadd.s32 1, %s473_s14   ;;  %s613_s9 = smov %s457_s10 }
 0x1ed   : > { %p12_p5 = scmp.ge.s32.totalorder %s15_s14, 4   ;;  %s614_s10 = smov %s461_s11 }
 0x1ee   : > { %s615_s11 = smov %s546_s22  ;;  %s616_s12 = smov %s469_s13 }
 0x1ef   : > { %s617_s13 = smov %s619_s17  ;;  %14 = sbr.rel (!%p12_p5) target bundleno = 4 (0x4), region = 70 }
 0x1f6   :  { %263 = vsyncpa [#allocation3], 1 }
 0x1f7   :  { %265 = vsyncpa [#allocation3 + $0x1], 1 }

</bundles_post_ra>
